<compile_context>
chip_gen: v5e
topology: v5e:2x2
jax: 0.10.0
libtpu: 0.0.40
codegen_flags: <defaults>
</compile_context>

<pallas_src>
import jax
import jax.numpy as jnp
from jax.experimental import pallas as pl
from jax.experimental.pallas import tpu as pltpu


def _fused_linear_sigmoid_kernel(p_ref, x_ref, o_ref):
    # p_ref: (4, 128) lane-alternating parameters:
    #   row 0: w_self  = [w00, w11, w00, w11, ...]
    #   row 1: w_other = [w01, w10, w01, w10, ...]
    #   row 2: bias    = [b0,  b1,  b0,  b1,  ...]
    #   row 3: f0_mask = [1.0, 0.0, 1.0, 0.0, ...]   (1.0 on feature-0 lanes)
    # x_ref / o_ref: (TILE_R, 128) slabs of the flat row-major (B, 2) buffer.
    x = x_ref[...]
    w_self = p_ref[0:1, :]
    w_other = p_ref[1:2, :]
    bias = p_ref[2:3, :]
    f0 = p_ref[3:4, :]

    # Partner feature for every lane: even lane j needs x[j+1] (roll by 127),
    # odd lane j needs x[j-1] (roll by 1).  np.roll semantics: roll(x,s)[j]=x[j-s].
    # Wrap-around lanes only land on the masked-out branch, so they are harmless.
    partner = f0 * pltpu.roll(x, 127, axis=1) + (1.0 - f0) * pltpu.roll(x, 1, axis=1)

    y = x * w_self + partner * w_other + bias
    # Exact sigmoid with a single EUP op: sigmoid(y) = 0.5 * tanh(0.5*y) + 0.5
    o_ref[...] = 0.5 * jnp.tanh(0.5 * y) + 0.5


def _build_lane_params(w, b, dtype):
    """Lane-parity-alternating weight/bias/mask rows, built once per call."""
    lane = jnp.arange(128)
    is_f0 = (lane % 2) == 0
    w = w.astype(dtype)
    b = b.astype(dtype)
    w_self = jnp.where(is_f0, w[0, 0], w[1, 1])
    w_other = jnp.where(is_f0, w[0, 1], w[1, 0])
    bias = jnp.where(is_f0, b[0], b[1])
    f0_mask = is_f0.astype(dtype)
    return jnp.stack([w_self, w_other, bias, f0_mask], axis=0)  # (4, 128)


def _net_forward_pallas(x, w, b, *, tile_r):
    batch = x.shape[0]
    n = 2 * batch
    flat = jnp.ravel(x)                 # (B, 2) row-major -> interleaved flat; free view
    pad = (-n) % 1024                   # make R = len/128 a multiple of 8
    if pad:
        # Only when B % 512 != 0; aligned batches pay zero extra HBM traffic.
        flat = jnp.pad(flat, (0, pad))
    r_total = flat.shape[0] // 128
    x2d = flat.reshape(r_total, 128)    # free view: lane parity == feature index

    tr = int(tile_r)
    tr = max(8, min(tr - (tr % 8), r_total))
    grid_r = pl.cdiv(r_total, tr)

    params = _build_lane_params(w, b, x.dtype)

    out2d = pl.pallas_call(
        _fused_linear_sigmoid_kernel,
        out_shape=jax.ShapeDtypeStruct((r_total, 128), x.dtype),
        grid_spec=pl.GridSpec(
            grid=(grid_r,),
            in_specs=[
                pl.BlockSpec((4, 128), lambda i: (0, 0)),    # params (resident)
                pl.BlockSpec((tr, 128), lambda i: (i, 0)),   # x slab
            ],
            out_specs=pl.BlockSpec((tr, 128), lambda i: (i, 0)),
        ),
        compiler_params=pltpu.CompilerParams(
            dimension_semantics=("parallel",),   # shards batch steps across TCs on v7x
            vmem_limit_bytes=32 * 1024 * 1024,   # >> 8 MiB double-buffered footprint
        ),
    )(params, x2d)

    # Interleaved output layout already matches torch's (B, 2); strip tail pad.
    return out2d.reshape(-1)[:n].reshape(batch, 2)


def net_forward(x, w, b, *, tile_r=4096, min_pallas_batch=1024):
    """Pallas equivalent of Net.forward.

    x: (B, 2) float32, w: (2, 2) float32 (torch nn.Linear layout [out, in]),
    b: (2,) float32.  Returns (B, 2) float32 = sigmoid(x @ w.T + b).
    """
    assert x.ndim == 2 and x.shape[1] == 2 and w.shape == (2, 2) and b.shape == (2,)
    if x.shape[0] < min_pallas_batch:
        # Tiny batches: fused XLA beats any custom kernel (launch/DMA >> 64 FLOPs).
        return jax.nn.sigmoid(x @ w.T + b)
    return _net_forward_pallas(x, w, b, tile_r=tile_r)


if __name__ == "__main__":
    key = jax.random.PRNGKey(0)
    kx, kw, kb, kx2 = jax.random.split(key, 4)

    B, F_in, F_out = 8, 2, 2
    x = jax.random.normal(kx, (B, F_in), dtype=jnp.float32)

    # Deterministic params mimicking nn.Linear's U(-1/sqrt(in), 1/sqrt(in)) init.
    bound = 1.0 / (2.0 ** 0.5)
    w = jax.random.uniform(kw, (F_out, F_in), jnp.float32, -bound, bound)
    b = jax.random.uniform(kb, (F_out,), jnp.float32, -bound, bound)

    ref_fn = lambda xx: jax.nn.sigmoid(xx @ w.T + b)

    # 1) Small batch forced through the Pallas kernel (tail-pad, single tile).
    out = net_forward(x, w, b, min_pallas_batch=0)
    jax.block_until_ready(out)
    assert out.shape == (B, F_out)
    assert jnp.allclose(out, ref_fn(x), atol=1e-5, rtol=1e-5), "mismatch (small B, pallas)"

    # 2) Small batch through the dispatcher (fused-XLA fast path).
    out_xla = net_forward(x, w, b)
    assert jnp.allclose(out_xla, ref_fn(x), atol=1e-6, rtol=1e-6), "mismatch (small B, xla)"

    # 3) Larger aligned batch through the multi-step pipelined grid (4 steps).
    B2 = 32768
    x2 = jax.random.normal(kx2, (B2, F_in), dtype=jnp.float32)
    out2 = net_forward(x2, w, b, tile_r=128)
    jax.block_until_ready(out2)
    assert jnp.allclose(out2, ref_fn(x2), atol=1e-5, rtol=1e-5), "mismatch (large B, pallas)"

    print("KERNEL_OK")
</pallas_src>

<mosaic_0001>
module attributes {stable_mosaic.version = 11 : i64} {
  func.func @_fused_linear_sigmoid_kernel(%arg0: i32, %arg1: memref<4x128xf32, #tpu.memory_space<vmem>>, %arg2: memref<8x128xf32, #tpu.memory_space<vmem>>, %arg3: memref<8x128xf32, #tpu.memory_space<vmem>>) attributes {dimension_semantics = [#tpu.dimension_semantics<parallel>], iteration_bounds = array<i64: 1>, scalar_prefetch = 0 : i64, scratch_operands = 0 : i64, tpu.core_type = #tpu.core_type<tc>, window_params = [{pipeline_mode = #tpu.pipeline_mode<synchronous>, transform_indices = @transform_0, window_bounds = array<i64: 4, 128>}, {transform_indices = @transform_1, window_bounds = array<i64: 8, 128>}, {transform_indices = @transform_2, window_bounds = array<i64: 8, 128>}]} {
    %c0 = arith.constant 0 : index
    %c0_0 = arith.constant 0 : index
    %0 = vector.load %arg2[%c0, %c0_0] : memref<8x128xf32, #tpu.memory_space<vmem>>, vector<8x128xf32>
    %c0_1 = arith.constant 0 : index
    %c0_2 = arith.constant 0 : index
    %1 = vector.load %arg1[%c0_1, %c0_2] : memref<4x128xf32, #tpu.memory_space<vmem>>, vector<1x128xf32>
    %c1 = arith.constant 1 : index
    %c0_3 = arith.constant 0 : index
    %2 = vector.load %arg1[%c1, %c0_3] : memref<4x128xf32, #tpu.memory_space<vmem>>, vector<1x128xf32>
    %c2 = arith.constant 2 : index
    %c0_4 = arith.constant 0 : index
    %3 = vector.load %arg1[%c2, %c0_4] : memref<4x128xf32, #tpu.memory_space<vmem>>, vector<1x128xf32>
    %c3 = arith.constant 3 : index
    %c0_5 = arith.constant 0 : index
    %4 = vector.load %arg1[%c3, %c0_5] : memref<4x128xf32, #tpu.memory_space<vmem>>, vector<1x128xf32>
    %c127_i32 = arith.constant 127 : i32
    %5 = tpu.dynamic_rotate %0 by %c127_i32 dim 1 : vector<8x128xf32>, i32 -> vector<8x128xf32>
    %6 = vector.broadcast %4 : vector<1x128xf32> to vector<8x128xf32>
    %7 = arith.mulf %6, %5 : vector<8x128xf32>
    %cst = arith.constant 1.000000e+00 : f32
    %8 = vector.broadcast %cst : f32 to vector<1x128xf32>
    %9 = arith.subf %8, %4 : vector<1x128xf32>
    %c1_i32 = arith.constant 1 : i32
    %10 = tpu.dynamic_rotate %0 by %c1_i32 dim 1 : vector<8x128xf32>, i32 -> vector<8x128xf32>
    %11 = vector.broadcast %9 : vector<1x128xf32> to vector<8x128xf32>
    %12 = arith.mulf %11, %10 : vector<8x128xf32>
    %13 = arith.addf %7, %12 : vector<8x128xf32>
    %14 = vector.broadcast %1 : vector<1x128xf32> to vector<8x128xf32>
    %15 = arith.mulf %0, %14 : vector<8x128xf32>
    %16 = vector.broadcast %2 : vector<1x128xf32> to vector<8x128xf32>
    %17 = arith.mulf %13, %16 : vector<8x128xf32>
    %18 = arith.addf %15, %17 : vector<8x128xf32>
    %19 = vector.broadcast %3 : vector<1x128xf32> to vector<8x128xf32>
    %20 = arith.addf %18, %19 : vector<8x128xf32>
    %cst_6 = arith.constant 5.000000e-01 : f32
    %21 = vector.broadcast %cst_6 : f32 to vector<8x128xf32>
    %22 = arith.mulf %21, %20 : vector<8x128xf32>
    %23 = math.tanh %22 : vector<8x128xf32>
    %cst_7 = arith.constant 5.000000e-01 : f32
    %24 = vector.broadcast %cst_7 : f32 to vector<8x128xf32>
    %25 = arith.mulf %24, %23 : vector<8x128xf32>
    %cst_8 = arith.constant 5.000000e-01 : f32
    %26 = vector.broadcast %cst_8 : f32 to vector<8x128xf32>
    %27 = arith.addf %25, %26 : vector<8x128xf32>
    %c0_9 = arith.constant 0 : index
    %c0_10 = arith.constant 0 : index
    %28 = vector.load %arg3[%c0_9, %c0_10] : memref<8x128xf32, #tpu.memory_space<vmem>>, vector<8x128xf32>
    tpu.vector_store %arg3[%c0_9, %c0_10], %27 {strides = array<i32>} : memref<8x128xf32, #tpu.memory_space<vmem>>, vector<8x128xf32>,
    return
  }
  func.func @transform_0(%arg0: i32) -> (i32, i32) {
    %c0_i32 = arith.constant 0 : i32
    %c0_i32_0 = arith.constant 0 : i32
    %c0_i32_1 = arith.constant 0 : i32
    return %c0_i32, %c0_i32_0 : i32, i32
  }
  func.func @transform_1(%arg0: i32) -> (i32, i32) {
    %c0_i32 = arith.constant 0 : i32
    %c0_i32_0 = arith.constant 0 : i32
    return %arg0, %c0_i32 : i32, i32
  }
  func.func @transform_2(%arg0: i32) -> (i32, i32) {
    %c0_i32 = arith.constant 0 : i32
    %c0_i32_0 = arith.constant 0 : i32
    return %arg0, %c0_i32 : i32, i32
  }
}

</mosaic_0001>

<bundles_post_ra>
// kernel: tpu_custom_call.1
= control target key start
LH: loop header
LB: loop body
LE: loop exit
PB: predicated region body
PF: predicated region fallthrough
CT: control target
= control target key end

     0   :  { %7 = vsyncpa [#allocation3], 0  ;;  %s203_s0 = inlined_call_operand.hbm [shape: f32[4,128], index: 0, kind: input, shape index: {}]   ;;  %s204_s1 = inlined_call_operand.hbm [shape: f32[8,128], index: 1, kind: input, shape index: {}]   ;;  %s205_s2 = inlined_call_operand.hbm [shape: f32[8,128], index: 2, kind: output, shape index: {}]  }
   0x1   :  { %8 = vsyncpa [#allocation6], 0 }
   0x2   :  { %9 = vsyncpa [#allocation4], 0  ;;  %s15_s11 = sshll.u32 %s203_s0, 4  ;;  %s174_s12 = smov [#allocation2]   ;;  %s16_s11 = int_to_ptr.hbm [resolvable:$true] %s15_s11 }
   0x3   :  { %s17_s13 = sshll.u32 %s174_s12, 4  ;;  %s26_s16 = sshll.u32 %s204_s1, 4  ;;  %s18_s13 = int_to_ptr.vmem [resolvable:$true] %s17_s13  ;;  %s27_s16 = int_to_ptr.hbm [resolvable:$true] %s26_s16 }
   0x4   :  { %20 = dma.hbm_to_vmem [thread:$0]  %s16_s11, 64, %s18_s13, [#allocation3]  }
   0x5   :  { %s175_s17 = smov [#allocation5]  }
   0x6   :  { %s28_s18 = sshll.u32 %s175_s17, 4  ;;  %s29_s18 = int_to_ptr.vmem [resolvable:$true] %s28_s18 }
   0x7   :  { %31 = dma.hbm_to_vmem [thread:$0]  %s27_s16, 128, %s29_s18, [#allocation6]  }
   0x8   :  { %168 = dma.done.wait [#allocation3], 64  }
   0x9   :  { %169 = vsyncadd [#allocation3], 4294967232 }
   0xa   :  { %170 = dma.done.wait [#allocation6], 128  }
   0xb   :  { %171 = vsyncadd [#allocation6], 4294967168  ;;  %v40_v0 = vld [vmem:[#allocation5] sm:$0xff]  ;;  %s176_s0 = smov 127   ;;  %s177_s19 = smov 1  }
   0xc   :  { %45 = vrot.lane.b32.xlu0 %v40_v0, %s176_s0  ;;  %v44_v1 = vld [vmem:[#allocation2 + $0x3] sm:$0x1]  ;;  %v90_v6 = vld [vmem:[#allocation2] ss:$0 sm:$0xff]  ;;  %v92_v9 = vld [vmem:[#allocation2 + $0x1] ss:$0 sm:$0xff] }
   0xd   :  { %v49_v3 = vsub.f32 1.0, %v44_v1  ;;  %v91_v4 = vld [vmem:[#allocation2 + $0x3] ss:$0 sm:$0xff]  ;;  %v56_v11 = vmul.f32 %v90_v6, %v40_v0  ;;  %v93_v13 = vld [vmem:[#allocation2 + $0x2] ss:$0 sm:$0xff]  ;;  %s178_s1 = smov [#allocation7]  }
   0xe   :  { %s72_s20 = sshll.u32 %s178_s1, 4  ;;  %s74_s23 = sshll.u32 %s205_s2, 4  ;;  %s73_s20 = int_to_ptr.vmem [resolvable:$true] %s72_s20  ;;  %s75_s23 = int_to_ptr.hbm [resolvable:$true] %s74_s23 }
   0xf   :  { %v52_v5 = vperm.slane %v49_v3, 0 }
  0x14   :  { %50 = vrot.lane.b32.xlu0 %v40_v0, %s177_s19 }
  0x7e   :  { %v46_v2 = vpop.permute.xlu0 %45 }
  0x7f   :  { %v48_v8 = vmul.f32 %v91_v4, %v46_v2 }
  0x86   :  { %v51_v7 = vpop.permute.xlu0 %50 }
  0x87   :  { %v53_v10 = vmul.f32 %v52_v5, %v51_v7 }
  0x89   :  { %v54_v12 = vadd.f32 %v53_v10, %v48_v8 }
  0x8b   :  { %v58_v14 = vmul.f32 %v92_v9, %v54_v12 }
  0x8d   :  { %v59_v15 = vadd.f32 %v58_v14, %v56_v11 }
  0x8f   :  { %v61_v16 = vadd.f32 %v93_v13, %v59_v15 }
  0x91   :  { %v62_v17 = vmul.f32 0.5, %v61_v16 }
  0x93   :  { %94 = vtanh.f32 %v62_v17 }
  0x99   :  { %v95_v18 = vpop.eup %94 }
  0x9a   :  { %v64_v19 = vmul.f32 0.5, %v95_v18 }
  0x9c   :  { %v65_v20 = vadd.f32 0.5, %v64_v19 }
  0x9e   :  { %66 = vst [vmem:[#allocation7] sm:$0xff] %v65_v20 }
  0x9f   :  { %77 = dma.vmem_to_hbm [thread:$0]  %s73_s20, 128, %s75_s23, [#allocation4]  }
  0xa0   :  { %172 = dma.done.wait [#allocation4], 128  }
  0xa1   :  { %173 = vsyncadd [#allocation4], 4294967168 }
  0xa2   :  { %82 = vsyncpa [#allocation3], 1 }
  0xa3   :  { %83 = vsyncpa [#allocation6], 1 }
  0xa4   :  { %84 = vsyncpa [#allocation4], 1 }

</bundles_post_ra>
